<compile_context>
chip_gen: v7x
topology: tpu7x:2x2x1
jax: 0.10.0
libtpu: 0.0.40
codegen_flags: <defaults>
</compile_context>

<pallas_src>
import functools

import jax
import jax.numpy as jnp
from jax import lax
from jax.experimental import pallas as pl
from jax.experimental.pallas import tpu as pltpu


def _round_up(x, m):
    return ((x + m - 1) // m) * m


def _largest_divisor_leq(n, cap):
    cap = max(1, min(n, cap))
    for t in range(cap, 0, -1):
        if n % t == 0:
            return t
    return 1


def _pick_tile(n, multiple, cap):
    """Largest divisor of n that is a multiple of `multiple` and <= cap (or None)."""
    t = (min(cap, n) // multiple) * multiple
    while t >= multiple:
        if n % t == 0:
            return t
        t -= multiple
    return None


def _take_column(x, col):
    # Extract one column as (rows, 1) via select + lane reduction (robust lowering
    # on all TPU generations; only runs once per output tile at finalize).
    idx = lax.broadcasted_iota(jnp.int32, x.shape, dimension=1)
    return jnp.sum(jnp.where(idx == col, x, 0.0), axis=1, keepdims=True)


def _vmem_limit(block_bytes):
    return int(min(48 * 1024 * 1024, max(24 * 1024 * 1024, block_bytes + 8 * 1024 * 1024)))


# ---------------------------------------------------------------------------
# Kernel 1: whole-graph blocks (small / medium N).  One grid step processes TB
# full graphs.  rhs is either X_aug (Din <= Dout) or the precomputed support
# (Din > Dout); when fold_col is set, rhs carries a ones-column so the row
# degree falls out of the same MXU matmul.
# ---------------------------------------------------------------------------
def gcn_small_kernel(*refs, apply_w, fold_col):
    if apply_w:
        adj_ref, rhs_ref, w_ref, b_ref, out_ref = refs
    else:
        adj_ref, rhs_ref, b_ref, out_ref = refs
        w_ref = None
    bias = b_ref[...]                                   # (1, Dout_p) f32
    w = w_ref[...] if apply_w else None                 # (R, Dout_p) bf16
    tb = adj_ref.shape[0]

    def process(t):
        adj = adj_ref[t].astype(jnp.bfloat16)           # in-kernel cast (f32/bf16/int8 in HBM)
        acc = jnp.dot(adj, rhs_ref[t], preferred_element_type=jnp.float32)
        if fold_col is not None:
            deg = _take_column(acc, fold_col)           # degree folded into the MXU matmul
        else:
            deg = jnp.sum(adj.astype(jnp.float32), axis=1, keepdims=True)
        inv_d = pl.reciprocal(deg + 1.0, approx=True)
        if apply_w:
            out = jnp.dot(acc.astype(jnp.bfloat16), w,
                          preferred_element_type=jnp.float32)
        else:
            out = acc
        out_ref[t] = (out * inv_d + bias).astype(out_ref.dtype)

    if tb <= 8:
        for t in range(tb):                             # short static unroll (LLO visibility)
            process(t)
    else:
        def body(t, carry):                             # bounds live ranges for large packs
            process(t)
            return carry
        lax.fori_loop(0, tb, body, 0)


# ---------------------------------------------------------------------------
# Kernel 2: tiled adjacency (large N).  Grid = (batch, row-tiles, k-tiles); k is
# last + "arbitrary".  A single lane-dense f32 accumulator carries A @ rhs
# across k-tiles (the degree rides in the ones-column when fold_col is set).
# ---------------------------------------------------------------------------
def gcn_tiled_kernel(*refs, apply_w, fold_col):
    if apply_w:
        adj_ref, rhs_ref, w_ref, b_ref, out_ref, acc_ref, *rest = refs
    else:
        adj_ref, rhs_ref, b_ref, out_ref, acc_ref, *rest = refs
        w_ref = None
    dsum_ref = rest[0] if fold_col is None else None

    k = pl.program_id(2)

    @pl.when(k == 0)
    def _init():
        acc_ref[...] = jnp.zeros_like(acc_ref)
        if fold_col is None:
            dsum_ref[...] = jnp.zeros_like(dsum_ref)

    adj = adj_ref[0].astype(jnp.bfloat16)                       # (tm, tk)
    acc_ref[...] += jnp.dot(adj, rhs_ref[0], preferred_element_type=jnp.float32)
    if fold_col is None:
        dsum_ref[...] += jnp.sum(adj.astype(jnp.float32), axis=1, keepdims=True)

    @pl.when(k == pl.num_programs(2) - 1)
    def _finalize():
        acc = acc_ref[...]
        if fold_col is not None:
            deg = _take_column(acc, fold_col)
        else:
            deg = dsum_ref[...]
        inv_d = pl.reciprocal(deg + 1.0, approx=True)
        if apply_w:
            out = jnp.dot(acc.astype(jnp.bfloat16), w_ref[...],
                          preferred_element_type=jnp.float32)
        else:
            out = acc
        out_ref[0] = (out * inv_d + b_ref[...]).astype(out_ref.dtype)


def graph_convolution(adjacency, input_feature, weight, bias=None, *,
                      tile_m=512, tile_k=1024,
                      small_input_budget=4 * 1024 * 1024,
                      max_single_block_n=1024):
    """GCN forward: (A @ (X @ W)) / (rowsum(A) + 1) + bias, output float32.

    adjacency:     (B, N, N)    any float/int dtype (binary graph -> exact in bf16/int8)
    input_feature: (B, N, Din)  float
    weight:        (Din, Dout)  float
    bias:          (Dout,) float or None
    """
    adjacency = jnp.asarray(adjacency)
    input_feature = jnp.asarray(input_feature)
    B, N, _ = adjacency.shape
    Din, Dout = weight.shape
    adj_itemsize = adjacency.dtype.itemsize

    # Put the cheaper of Din/Dout on the N^2 matmul.
    a_x_first = Din <= Dout
    Dout_p = _round_up(Dout, 128)

    # Lane-dense bias.
    b_vec = (jnp.zeros((Dout,), jnp.float32) if bias is None
             else jnp.asarray(bias, jnp.float32))
    b_pad = jnp.zeros((1, Dout_p), jnp.float32).at[0, :Dout].set(b_vec)

    x_bf = input_feature.astype(jnp.bfloat16)        # X is tiny vs. A; cheap wrapper cast
    w_bf = jnp.asarray(weight, jnp.bfloat16)

    if a_x_first:
        # kernel computes (A @ X_aug) then applies W; ones-col at Din gives degree.
        fold = (Din % 128) != 0
        fold_col = Din if fold else None
        R = _round_up(Din + 1, 128) if fold else Din
        parts = [x_bf]
        used = Din
        if fold:
            parts.append(jnp.ones((B, N, 1), jnp.bfloat16))
            used += 1
        if R - used > 0:
            parts.append(jnp.zeros((B, N, R - used), jnp.bfloat16))
        rhs = jnp.concatenate(parts, axis=-1) if len(parts) > 1 else x_bf
        w_aug = jnp.zeros((R, Dout_p), jnp.bfloat16).at[:Din, :Dout].set(w_bf)
        apply_w = True
    else:
        # support = X @ W hoisted out of the kernel (computed once, bf16 MXU);
        # kernel is pure A @ support_aug; ones-col at Dout gives degree.
        fold = (Dout % 128) != 0
        fold_col = Dout if fold else None
        R = Dout_p
        support = jnp.einsum("bnd,de->bne", x_bf, w_bf,
                             preferred_element_type=jnp.float32).astype(jnp.bfloat16)
        parts = [support]
        used = Dout
        if fold:
            parts.append(jnp.ones((B, N, 1), jnp.bfloat16))
            used += 1
        if R - used > 0:
            parts.append(jnp.zeros((B, N, R - used), jnp.bfloat16))
        rhs = jnp.concatenate(parts, axis=-1) if len(parts) > 1 else support
        w_aug = None
        apply_w = False

    if N <= max_single_block_n:
        # ---- whole-graph path: pack TB graphs per grid step ------------------
        per_batch = N * N * adj_itemsize + N * R * 2 + N * Dout_p * 4
        tb_cap = max(1, small_input_budget // per_batch)
        if B >= 2:
            tb_cap = min(tb_cap, B // 2)      # keep >= 2 grid steps (v7x megacore)
        TB = _largest_divisor_leq(B, tb_cap)

        in_specs = [
            pl.BlockSpec((TB, N, N), lambda t: (t, 0, 0)),     # adjacency (original dtype)
            pl.BlockSpec((TB, N, R), lambda t: (t, 0, 0)),     # X_aug / support_aug (bf16)
        ]
        args = [adjacency, rhs]
        if apply_w:
            in_specs.append(pl.BlockSpec((R, Dout_p), lambda t: (0, 0)))
            args.append(w_aug)
        in_specs.append(pl.BlockSpec((1, Dout_p), lambda t: (0, 0)))
        args.append(b_pad)

        out = pl.pallas_call(
            functools.partial(gcn_small_kernel, apply_w=apply_w, fold_col=fold_col),
            out_shape=jax.ShapeDtypeStruct((B, N, Dout_p), jnp.float32),
            grid_spec=pltpu.PrefetchScalarGridSpec(
                num_scalar_prefetch=0,
                grid=(B // TB,),
                in_specs=in_specs,
                out_specs=pl.BlockSpec((TB, N, Dout_p), lambda t: (t, 0, 0)),
            ),
            compiler_params=pltpu.CompilerParams(
                dimension_semantics=("parallel",),
                vmem_limit_bytes=_vmem_limit(2 * per_batch * TB),
            ),
        )(*args)
        return out if Dout_p == Dout else out[:, :, :Dout]

    # ---- tiled path: grid over (batch, row-tiles, k-tiles), k last -----------
    # Choose divisor tiles so the adjacency needs no HBM-side padding pass.
    mult_m = max(8, 32 // adj_itemsize)       # sublane tiling: 8 f32 / 16 bf16 / 32 int8
    tm = _pick_tile(N, mult_m, tile_m)
    tk = _pick_tile(N, 128, tile_k)
    adj_in, rhs_in, Nm, Nk = adjacency, rhs, N, N
    if tm is None or tk is None:
        # Rare awkward N: pad (costs one extra HBM pass over A).
        Nm = _round_up(N, mult_m)
        Nk = _round_up(N, 128)
        adj_in = jnp.pad(adjacency, ((0, 0), (0, Nm - N), (0, Nk - N)))
        rhs_in = jnp.pad(rhs, ((0, 0), (0, Nk - N), (0, 0)))
        tm = _pick_tile(Nm, mult_m, tile_m)
        tk = _pick_tile(Nk, 128, tile_k)

    in_specs = [
        pl.BlockSpec((1, tm, tk), lambda b, i, k: (b, i, k)),  # adjacency (original dtype)
        pl.BlockSpec((1, tk, R), lambda b, i, k: (b, k, 0)),   # X_aug / support_aug (bf16)
    ]
    args = [adj_in, rhs_in]
    if apply_w:
        in_specs.append(pl.BlockSpec((R, Dout_p), lambda b, i, k: (0, 0)))
        args.append(w_aug)
    in_specs.append(pl.BlockSpec((1, Dout_p), lambda b, i, k: (0, 0)))
    args.append(b_pad)

    scratch = [pltpu.VMEM((tm, R), jnp.float32)]               # lane-dense accumulator
    if fold_col is None:
        scratch.append(pltpu.VMEM((tm, 1), jnp.float32))       # explicit degree fallback

    block_bytes = tm * tk * adj_itemsize + tk * R * 2 + tm * Dout_p * 4

    out = pl.pallas_call(
        functools.partial(gcn_tiled_kernel, apply_w=apply_w, fold_col=fold_col),
        out_shape=jax.ShapeDtypeStruct((B, Nm, Dout_p), jnp.float32),
        grid_spec=pltpu.PrefetchScalarGridSpec(
            num_scalar_prefetch=0,
            grid=(B, Nm // tm, Nk // tk),
            in_specs=in_specs,
            out_specs=pl.BlockSpec((1, tm, Dout_p), lambda b, i, k: (b, i, 0)),
            scratch_shapes=scratch,
        ),
        compiler_params=pltpu.CompilerParams(
            dimension_semantics=("parallel", "parallel", "arbitrary"),
            vmem_limit_bytes=_vmem_limit(2 * block_bytes + tm * R * 4),
        ),
    )(*args)
    if Nm != N or Dout_p != Dout:
        out = out[:, :N, :Dout]
    return out


# ---------------------------------------------------------------------------
# Self-test
# ---------------------------------------------------------------------------
def _reference(adjacency, input_feature, weight, bias):
    hp = lax.Precision.HIGHEST
    support = jnp.einsum("bnd,de->bne", input_feature, weight, precision=hp)
    d = jnp.sum(adjacency, axis=2, keepdims=True) + 1.0
    out = jnp.einsum("bnm,bme->bne", adjacency, support, precision=hp) / d
    if bias is not None:
        out = out + bias
    return out


def _run_case(key, B, N, Din, Dout, adj_dtype=None, **kw):
    k_adj, k_x, k_w, k_b = jax.random.split(key, 4)
    adj_f32 = (jax.random.uniform(k_adj, (B, N, N)) > 0.7).astype(jnp.float32)
    adj_in = adj_f32 if adj_dtype is None else adj_f32.astype(adj_dtype)
    x = jax.random.normal(k_x, (B, N, Din), dtype=jnp.float32)
    # kaiming_normal_-like init; nonzero bias to exercise the add
    w = jax.random.normal(k_w, (Din, Dout), dtype=jnp.float32) * (2.0 / Din) ** 0.5
    b = 0.1 * jax.random.normal(k_b, (Dout,), dtype=jnp.float32)

    out = jax.block_until_ready(graph_convolution(adj_in, x, w, b, **kw))
    assert out.shape == (B, N, Dout) and out.dtype == jnp.float32

    ref = _reference(adj_f32, x, w, b)
    ok = jnp.allclose(out, ref, atol=3e-2, rtol=3e-2)
    assert ok, f"mismatch: max |diff| = {float(jnp.max(jnp.abs(out - ref)))}"


if __name__ == "__main__":
    root = jax.random.PRNGKey(0)
    keys = jax.random.split(root, 7)
    # (a) small path, (A@X)@W order, degree folded into the MXU
    _run_case(keys[0], B=2, N=16, Din=32, Dout=64)
    # (b) small path, A@(X@W) order (support hoisted), Dout not /128 -> fold
    _run_case(keys[1], B=2, N=16, Din=64, Dout=48)
    # (c) small path, many graphs packed per step -> fori_loop body
    _run_case(keys[2], B=32, N=16, Din=32, Dout=64)
    # (d) small path, Din multiple of 128 -> explicit row-sum fallback
    _run_case(keys[3], B=2, N=16, Din=128, Dout=256)
    # (e) tiled path (forced), multi-step k reduction, f32 adjacency
    _run_case(keys[4], B=2, N=256, Din=32, Dout=64,
              tile_m=128, tile_k=128, max_single_block_n=64)
    # (f) tiled path, int8 adjacency storage (recommended), A@(X@W) order
    _run_case(keys[5], B=2, N=256, Din=64, Dout=32,
              max_single_block_n=64, adj_dtype=jnp.int8)
    # (g) tiled path, degree-fold disabled (Dout multiple of 128) -> dsum scratch
    _run_case(keys[6], B=2, N=256, Din=160, Dout=128,
              tile_m=128, tile_k=128, max_single_block_n=64)
    print("KERNEL_OK")
</pallas_src>

<mosaic_0001>
module attributes {stable_mosaic.version = 11 : i64} {
  func.func @gcn_small_kernel(%arg0: i32, %arg1: memref<1x16x16xf32, #tpu.memory_space<vmem>>, %arg2: memref<1x16x128xbf16, #tpu.memory_space<vmem>>, %arg3: memref<128x128xbf16, #tpu.memory_space<vmem>>, %arg4: memref<1x128xf32, #tpu.memory_space<vmem>>, %arg5: memref<1x16x128xf32, #tpu.memory_space<vmem>>) attributes {dimension_semantics = [#tpu.dimension_semantics<parallel>], iteration_bounds = array<i64: 2>, scalar_prefetch = 0 : i64, scratch_operands = 0 : i64, tpu.core_type = #tpu.core_type<tc>, window_params = [{transform_indices = @transform_0, window_bounds = array<i64: 1, 16, 16>}, {transform_indices = @transform_1, window_bounds = array<i64: 1, 16, 128>}, {pipeline_mode = #tpu.pipeline_mode<synchronous>, transform_indices = @transform_2, window_bounds = array<i64: 128, 128>}, {pipeline_mode = #tpu.pipeline_mode<synchronous>, transform_indices = @transform_3, window_bounds = array<i64: 1, 128>}, {transform_indices = @transform_4, window_bounds = array<i64: 1, 16, 128>}]} {
    %c0 = arith.constant 0 : index
    %c0_0 = arith.constant 0 : index
    %0 = vector.load %arg4[%c0, %c0_0] : memref<1x128xf32, #tpu.memory_space<vmem>>, vector<1x128xf32>
    %c0_1 = arith.constant 0 : index
    %c0_2 = arith.constant 0 : index
    %1 = vector.load %arg3[%c0_1, %c0_2] : memref<128x128xbf16, #tpu.memory_space<vmem>>, vector<128x128xbf16>
    %c0_3 = arith.constant 0 : index
    %c0_4 = arith.constant 0 : index
    %c0_5 = arith.constant 0 : index
    %2 = vector.load %arg1[%c0_3, %c0_4, %c0_5] : memref<1x16x16xf32, #tpu.memory_space<vmem>>, vector<1x16x16xf32>
    %3 = vector.shape_cast %2 : vector<1x16x16xf32> to vector<16x16xf32>
    %4 = arith.truncf %3 : vector<16x16xf32> to vector<16x16xbf16>
    %c0_6 = arith.constant 0 : index
    %c0_7 = arith.constant 0 : index
    %c0_8 = arith.constant 0 : index
    %5 = vector.load %arg2[%c0_6, %c0_7, %c0_8] : memref<1x16x128xbf16, #tpu.memory_space<vmem>>, vector<1x16x128xbf16>
    %6 = vector.shape_cast %5 : vector<1x16x128xbf16> to vector<16x128xbf16>
    %cst = arith.constant dense<0.000000e+00> : vector<16x128xf32>
    %7 = tpu.matmul %4, %6, %cst {dimension_numbers = #tpu.dot_dimension_numbers<[1], [0], [0], [1], [0, 0, 1, 1], [], []>} : vector<16x16xbf16>, vector<16x128xbf16>, vector<16x128xf32> -> vector<16x128xf32>
    %8 = tpu.iota {dimensions = array<i32: 1>} : vector<16x128xi32>
    %c32_i32 = arith.constant 32 : i32
    %9 = vector.broadcast %c32_i32 : i32 to vector<16x128xi32>
    %10 = arith.cmpi eq, %8, %9 : vector<16x128xi32>
    %cst_9 = arith.constant 0.000000e+00 : f32
    %11 = vector.broadcast %cst_9 : f32 to vector<16x128xf32>
    %12 = arith.select %10, %7, %11 : vector<16x128xi1>, vector<16x128xf32>
    %cst_10 = arith.constant dense<0.000000e+00> : vector<16xf32>
    %13 = vector.multi_reduction <add>, %12, %cst_10 [1] : vector<16x128xf32> to vector<16xf32>
    %14 = vector.shape_cast %13 : vector<16xf32> to vector<16x1xf32>
    %cst_11 = arith.constant 1.000000e+00 : f32
    %15 = vector.broadcast %cst_11 : f32 to vector<16x1xf32>
    %16 = arith.addf %14, %15 : vector<16x1xf32>
    %17 = tpu.reciprocal %16 {approx = true} : vector<16x1xf32> -> vector<16x1xf32>
    %18 = arith.truncf %7 : vector<16x128xf32> to vector<16x128xbf16>
    %cst_12 = arith.constant dense<0.000000e+00> : vector<16x128xf32>
    %19 = tpu.matmul %18, %1, %cst_12 {dimension_numbers = #tpu.dot_dimension_numbers<[1], [0], [0], [1], [0, 0, 1, 1], [], []>} : vector<16x128xbf16>, vector<128x128xbf16>, vector<16x128xf32> -> vector<16x128xf32>
    %20 = vector.broadcast %17 : vector<16x1xf32> to vector<16x128xf32>
    %21 = arith.mulf %19, %20 : vector<16x128xf32>
    %22 = vector.broadcast %0 : vector<1x128xf32> to vector<16x128xf32>
    %23 = arith.addf %21, %22 : vector<16x128xf32>
    %c0_13 = arith.constant 0 : index
    %c0_14 = arith.constant 0 : index
    %c0_15 = arith.constant 0 : index
    %24 = vector.load %arg5[%c0_13, %c0_14, %c0_15] : memref<1x16x128xf32, #tpu.memory_space<vmem>>, vector<1x16x128xf32>
    %25 = vector.shape_cast %24 : vector<1x16x128xf32> to vector<16x128xf32>
    %26 = vector.shape_cast %23 : vector<16x128xf32> to vector<1x16x128xf32>
    tpu.vector_store %arg5[%c0_13, %c0_14, %c0_15], %26 {strides = array<i32>} : memref<1x16x128xf32, #tpu.memory_space<vmem>>, vector<1x16x128xf32>,
    return
  }
  func.func @transform_0(%arg0: i32) -> (i32, i32, i32) {
    %c0_i32 = arith.constant 0 : i32
    %c0_i32_0 = arith.constant 0 : i32
    %c0_i32_1 = arith.constant 0 : i32
    return %arg0, %c0_i32, %c0_i32_0 : i32, i32, i32
  }
  func.func @transform_1(%arg0: i32) -> (i32, i32, i32) {
    %c0_i32 = arith.constant 0 : i32
    %c0_i32_0 = arith.constant 0 : i32
    %c0_i32_1 = arith.constant 0 : i32
    return %arg0, %c0_i32, %c0_i32_0 : i32, i32, i32
  }
  func.func @transform_2(%arg0: i32) -> (i32, i32) {
    %c0_i32 = arith.constant 0 : i32
    %c0_i32_0 = arith.constant 0 : i32
    %c0_i32_1 = arith.constant 0 : i32
    return %c0_i32, %c0_i32_0 : i32, i32
  }
  func.func @transform_3(%arg0: i32) -> (i32, i32) {
    %c0_i32 = arith.constant 0 : i32
    %c0_i32_0 = arith.constant 0 : i32
    %c0_i32_1 = arith.constant 0 : i32
    return %c0_i32, %c0_i32_0 : i32, i32
  }
  func.func @transform_4(%arg0: i32) -> (i32, i32, i32) {
    %c0_i32 = arith.constant 0 : i32
    %c0_i32_0 = arith.constant 0 : i32
    %c0_i32_1 = arith.constant 0 : i32
    return %arg0, %c0_i32, %c0_i32_0 : i32, i32, i32
  }
}

</mosaic_0001>

<bundles_post_ra>
// kernel: tpu_custom_call.1
= control target key start
LH: loop header
LB: loop body
LE: loop exit
PB: predicated region body
PF: predicated region fallthrough
CT: control target
= control target key end

     0   :  { %s1192_s0 = inlined_call_operand.hbm [shape: f32[2,16,16], index: 0, kind: input, shape index: {}]   ;;  %s1193_s1 = inlined_call_operand.hbm [shape: bf16[2,16,128], index: 1, kind: input, shape index: {}]   ;;  %s1194_s2 = inlined_call_operand.hbm [shape: bf16[128,128], index: 2, kind: input, shape index: {}]   ;;  %s1195_s3 = inlined_call_operand.vmem [shape: f32[1,128], index: 3, kind: input, shape index: {}]   ;;  %s1196_s4 = inlined_call_operand.hbm [shape: f32[2,16,128], index: 4, kind: output, shape index: {}]  }
   0x1   :  { %1202 = sst [smem:[#allocation13_spill]] %s1192_s0 }
   0x2   :  { %1203 = sst [smem:[#allocation14_spill]] %s1194_s2 }
   0x3   :  { %9 = vsyncpa [#allocation3], 0 }
   0x4   :  { %11 = vsyncpa [#allocation3 + $0x1], 0 }
   0x5   :  { %12 = vsyncpa [#allocation6], 0 }
   0x6   :  { %14 = vsyncpa [#allocation6 + $0x1], 0 }
   0x7   :  { %15 = vsyncpa [#allocation4], 0 }
   0x8   :  { %17 = vsyncpa [#allocation4 + $0x1], 0  ;;  %s933_s15 = smov 0   ;;  %s935_s16 = smov 0  }
   0x9   :  { %s937_s17 = smov 0   ;;  %s939_s18 = smov 0  }
   0xa LB: > { %s954_s19 = sadd.s32 4294967295, %s894_s18   ;;  %s578_s20 = sadd.s32 4294967294, %s894_s18   ;;  %s894_s18 = sphi %s939_s18, %s1224_s18   ;;  %s890_s17 = sphi %s937_s17, %s1223_s17   ;;  %s886_s16 = sphi %s935_s16, %s1222_s16   ;;  %s882_s15 = sphi %s933_s15, %s1221_s15  }
   0xb   : > { %p43_p0 = scmp.ne.s32.totalorder %s886_s16, %s882_s15  ;;  %p1197_p1 = scmp.eq.s32.totalorder %s954_s19, 0 }
   0xc   : > { %p141_p3 = scmp.eq.s32.totalorder %s578_s20, 1  ;;  %p579_p5 = scmp.ge.s32.totalorder %s894_s18, 1 }
   0xd   : > { %p963_p4 = por %p1197_p1, %p43_p0  ;;  %p148_p7 = scmp.lt.s32.totalorder %s894_s18, 3 }
   0xe   : > { %p968_p6 = por %p141_p3, %p43_p0  ;;  %s896_s24 = smov [#allocation7]  }
   0xf   : > { %s1204_s21 = scalar_select %p963_p4, 1, 0 }
  0x10   : > { %s1205_s22 = scalar_select %p968_p6, 1, 0 }
  0x11   : > { %p973_p8 = pnand %p579_p5, %p148_p7  ;;  %s160_s25 = sshll.u32 %s896_s24, 4  ;;  %s977_s25 = int_to_ptr.vmem [resolvable:$true] %s160_s25 }
  0x12   : > { %s989_s27 = sadd.s32 1, %s894_s18   ;;  %s30_s28 = sadd.s32 1, %s890_s17 }
  0x13   : > { %s1206_s23 = scalar_select %p973_p8, 1, 0 }
  0x14   : > { %p659_p9 = pneg %p973_p8  ;;  %s27_s29 = ssub.s32 %s894_s18, %s989_s27 }
  0x15   : > { %s1208_s2 = sld [smem:[#allocation14_spill]] }
  0x16   : > { %p984_p11 = pnand %p659_p9, %p1197_p1 }
  0x18   : > { %p734_p13 = pneg %p984_p11 }
  0x1b   : > { %s732_s6 = scalar_lea.hbm %s1208_s2, 1024 }
  0x1c   : > { %p733_p12 = scmp.ne.s32.totalorder %s1208_s2, %s732_s6  ;;  %p739_p5 = scmp.lt.u32.totalorder %s732_s6, %s1208_s2 }
  0x1e   : > { %p735_p0 = pnand %p734_p13, %p733_p12 }
  0x20   : > { %p736_p3 = pneg %p735_p0 }
  0x22   : > { %p741_p7 = pnand %p739_p5, %p736_p3 }
  0x24   : > { %744 = shalt.err (!%p741_p7)
}
  0x25   : > { %s745_s11 = scalar_lea.vmem %s977_s25, 1024  ;;  %p753_p2 = scmp.lt.s32.totalorder %s977_s25, %s977_s25 }
  0x26   : > { %p746_p9 = scmp.ne.s32.totalorder %s977_s25, %s745_s11  ;;  %p754_p6 = scmp.lt.s32.totalorder %s745_s11, %s745_s11 }
  0x28   : > { %p748_p10 = pnand %p746_p9, %p734_p13  ;;  %p755_p4 = por %p754_p6, %p753_p2 }
  0x2a   : > { %p749_p1 = pneg %p748_p10 }
  0x2c   : > { %p756_p8 = pnand %p755_p4, %p749_p1 }
  0x2e   : > { %759 = shalt.err (!%p756_p8)
}
  0x2f   : > { %s1200_s12 = smov 64   ;;  %s1201_s13 = smov 4  }
  0x30   : > { %662 = dma.hbm_to_vmem [thread:$0]  (!%p984_p11), %s1208_s2, 1024, %s977_s25, [#allocation6], %s1200_s12, %s1200_s12, %s1201_s13  }
  0x31   : > { %p28_p1 = scmp.eq.s32.totalorder %s27_s29, 0  ;;  %p37_p2 = scmp.ne.s32.totalorder %s890_s17, %s886_s16 }
  0x32   : > { %p38_p4 = scmp.eq.s32.totalorder %s894_s18, 0  ;;  %p675_p6 = scmp.lt.s32.totalorder %s894_s18, 2 }
  0x33   : > { %s1023_s24 = scalar_select %p28_p1, %s890_s17, %s30_s28  }
  0x34   : > { %p39_p8 = por %p38_p4, %p37_p2  ;;  %p1209_p10 = scmp.eq.s32.totalorder %s954_s19, 1 }
  0x35   : > { %s1032_s26 = sand.u32 1, %s890_s17   ;;  %s609_s5 = sshll.u32 %s894_s18, 8 }
  0x36   : > { %p1027_p12 = por %p1209_p10, %p37_p2  ;;  %s582_s6 = sshll.u32 %s1032_s26, 4 }
  0x37   : > { %s1211_s0 = sld [smem:[#allocation13_spill]]  ;;  %s181_s28 = scalar_lea.vmem [#allocation2], %s582_s6 }
  0x38   : > { %s188_s8 = sshll.u32 %s181_s28, 4  ;;  %p1041_p11 = pnand %p675_p6, %p39_p8  ;;  %s1045_s8 = int_to_ptr.vmem [resolvable:$true] %s188_s8 }
  0x39   : > { %s178_s10 = scalar_lea.sflag [#allocation3], %s1032_s26 }
  0x3a   : > { %p762_p0 = pneg %p1041_p11 }
  0x3d   : > { %s1039_s29 = scalar_lea.hbm %s1211_s0, %s609_s5  ;;  %s765_s5 = scalar_lea.hbm %s1211_s0, 512 }
  0x3e   : > { %s760_s11 = scalar_lea.hbm %s1039_s29, 256  ;;  %p766_p7 = scmp.lt.u32.totalorder %s1039_s29, %s1211_s0 }
  0x3f   : > { %p761_p13 = scmp.ne.s32.totalorder %s1039_s29, %s760_s11  ;;  %p767_p9 = scmp.lt.u32.totalorder %s765_s5, %s760_s11 }
  0x40   : > { %p769_p2 = scmp.lt.u32.totalorder %s760_s11, %s1039_s29 }
  0x41   : > { %p763_p3 = pnand %p762_p0, %p761_p13  ;;  %p768_p1 = por %p767_p9, %p766_p7 }
  0x43   : > { %p764_p5 = pneg %p763_p3  ;;  %p770_p4 = por %p769_p2, %p768_p1 }
  0x45   : > { %p771_p6 = pnand %p770_p4, %p764_p5 }
  0x47   : > { %774 = shalt.err (!%p771_p6)
}
  0x48   : > { %s775_s25 = scalar_lea.vmem %s1045_s8, 256  ;;  %s899_s28 = smov [#allocation2]  }
  0x49   : > { %p776_p8 = scmp.ne.s32.totalorder %s1045_s8, %s775_s25  ;;  %s780_s14 = sshll.u32 %s899_s28, 4  ;;  %s781_s14 = int_to_ptr.vmem [resolvable:$false] %s780_s14 }
  0x4a   : > { %s782_s20 = scalar_lea.vmem %s781_s14, 512  ;;  %p783_p3 = scmp.lt.s32.totalorder %s1045_s8, %s781_s14 }
  0x4b   : > { %p778_p10 = pnand %p776_p8, %p762_p0  ;;  %p784_p7 = scmp.lt.s32.totalorder %s782_s20, %s775_s25 }
  0x4d   : > { %p779_p13 = pneg %p778_p10  ;;  %p785_p9 = por %p784_p7, %p783_p3 }
  0x4f   : > { %p786_p1 = pnand %p785_p9, %p779_p13 }
  0x51   : > { %789 = shalt.err (!%p786_p1)
}
  0x52   : > { %s900_s11 = smov 128   ;;  %s901_s5 = smov 8  }
  0x53   : > { %666 = dma.hbm_to_vmem [thread:$0]  (!%p1041_p11), %s1039_s29, 256, %s1045_s8, %s178_s10, %s900_s11, %s900_s11, %s901_s5  }
  0x54   : > { %s198_s6 = sand.u32 1, %s894_s18   ;;  %s585_s7 = sshll.u32 %s1032_s26, 3 }
  0x55   : > { %s610_s28 = sshll.u32 %s894_s18, 7  ;;  %s202_s25 = scalar_lea.vmem [#allocation5], %s585_s7 }
  0x56   : > { %s209_s14 = sshll.u32 %s202_s25, 4  ;;  %s1081_s13 = scalar_lea.hbm %s1193_s1, %s610_s28  ;;  %s1083_s14 = int_to_ptr.vmem [resolvable:$true] %s209_s14 }
  0x57   : > { %s1085_s0 = scalar_lea.sflag [#allocation6], %s198_s6  ;;  %s790_s2 = scalar_lea.hbm %s1081_s13, 128 }
  0x58   : > { %p791_p5 = scmp.ne.s32.totalorder %s1081_s13, %s790_s2  ;;  %s795_s12 = scalar_lea.hbm %s1193_s1, 256 }
  0x59   : > { %p796_p6 = scmp.lt.u32.totalorder %s1081_s13, %s1193_s1  ;;  %p797_p8 = scmp.lt.u32.totalorder %s795_s12, %s790_s2 }
  0x5a   : > { %p793_p2 = pnand %p791_p5, %p762_p0  ;;  %p799_p13 = scmp.lt.u32.totalorder %s790_s2, %s1081_s13 }
  0x5b   : > { %p798_p10 = por %p797_p8, %p796_p6 }
  0x5c   : > { %p794_p4 = pneg %p793_p2 }
  0x5d   : > { %p800_p3 = por %p799_p13, %p798_p10 }
  0x5f   : > { %p801_p7 = pnand %p800_p3, %p794_p4 }
  0x61   : > { %804 = shalt.err (!%p801_p7)
}
  0x62   : > { %s805_s11 = scalar_lea.vmem %s1083_s14, 128  ;;  %s902_s5 = smov [#allocation5]  }
  0x63   : > { %p806_p9 = scmp.ne.s32.totalorder %s1083_s14, %s805_s11  ;;  %s810_s6 = sshll.u32 %s902_s5, 4  ;;  %s811_s6 = int_to_ptr.vmem [resolvable:$false] %s810_s6 }
  0x64   : > { %s812_s7 = scalar_lea.vmem %s811_s6, 256  ;;  %p813_p2 = scmp.lt.s32.totalorder %s1083_s14, %s811_s6 }
  0x65   : > { %p808_p1 = pnand %p806_p9, %p762_p0  ;;  %p814_p6 = scmp.lt.s32.totalorder %s812_s7, %s805_s11 }
  0x67   : > { %p809_p5 = pneg %p808_p1  ;;  %p815_p8 = por %p814_p6, %p813_p2 }
  0x69   : > { %p816_p10 = pnand %p815_p8, %p809_p5 }
  0x6b   : > { %819 = shalt.err (!%p816_p10)
}
  0x6c   : > { %s1213_s2 = smov 4   ;;  %s1214_s28 = smov 64  }
  0x6d   : > { %669 = dma.hbm_to_vmem [thread:$0]  (!%p1041_p11), %s1081_s13, 128, %s1083_s14, %s1085_s0, %s1214_s28, %s1214_s28, %s1213_s2  }
  0x6e   : > { %p1215_p0 = scmp.ne.s32.totalorder %s1206_s23, 0 }
  0x6f   : > { %s1117_s25 = sand.u32 (!%p1215_p0), 1, %s886_s16   ;;  %p1216_p4 = scmp.ne.s32.totalorder (!%p1215_p0), %s1204_s21, 0 }
  0x70   : > { %221 = sbr.rel (%p1215_p0) target bundleno = 581 (0x245), region = 36  ;;  %s589_s20 = sshll.u32 (!%p1215_p0), %s1117_s25, 4 }
  0x71   : > { %s224_s26 = scalar_lea.sflag (!%p1215_p0), [#allocation3], %s1117_s25  ;;  %s227_s9 = scalar_lea.vmem (!%p1215_p0), [#allocation2], %s589_s20 }
  0x77   : > { %865 = dma.done.wait (%p1216_p4), %s224_s26, 256  }
  0x78   : > { %867 = vsyncadd (%p1216_p4), %s224_s26, 4294967040  ;;  %s232_s0 = sand.u32 1, %s954_s19   ;;  %s590_s23 = sshll.u32 %s1117_s25, 3 }
  0x79   : > { %s233_s13 = scalar_lea.sflag [#allocation6], %s232_s0  ;;  %s236_s14 = scalar_lea.vmem [#allocation5], %s590_s23 }
  0x7a   : > { %869 = dma.done.wait (%p1216_p4), %s233_s13, 128  }
  0x7b   : > { %871 = vsyncadd (%p1216_p4), %s233_s13, 4294967168  ;;  %p1217_p11 = scmp.eq.s32.totalorder %s954_s19, 0 }
  0x7d   : > { %873 = dma.done.wait (%p1217_p11), [#allocation6], 1024   ;;  %p1218_p13 = pmov %p1217_p11 }
  0x7e   : > { %v903_v0 = vmov 0.0   ;;  %vm904_vm0 = vmmov 0   ;;  %v719_v1 = vld [vmem:[%s236_s14] sm:$0xff]   ;;  %v289_v3 = vld [vmem:[%s227_s9 + $0x8] sm:$0xff]  ;;  %vm299_vm1 = vcmask 130048   ;;  %v720_v5 = vld [vmem:[#allocation7] sm:$0xff]   ;;  %v344_v13 = vlaneseq }
  0x7f   : > { %875 = vsyncadd (%p1218_p13), [#allocation6], 4294966272  ;;  %623 = vmatprep.subr.bf16.mxu0 %v903_v0  ;;  %625 = vmatprep.mubr.msk.bf16.mxu0 %vm904_vm0, %v903_v0  ;;  %v288_v2 = vld [vmem:[%s227_s9] sm:$0xff]  ;;  %v721_v6 = vld [vmem:[#allocation7 + $0x8] sm:$0xff]   ;;  %s269_s12 = scalar_lea.vmem [#allocation8], %s589_s20  ;;  %s611_s10 = sshll.u32 %s954_s19, 8 }
  0x80   : > { %629 = vmatprep.subr.bf16.mxu1 %v903_v0  ;;  %645 = vmatprep.mubr.msk.bf16.mxu1 %vm904_vm0, %v903_v0  ;;  %v290_v4 = vpack.c.bf16 %v289_v3, %v288_v2  ;;  %v722_v7 = vld [vmem:[#allocation7 + $0x10] sm:$0xff]   ;;  %v723_v8 = vld [vmem:[#allocation7 + $0x18] sm:$0xff]   ;;  %v724_v9 = vld [vmem:[#allocation7 + $0x20] sm:$0xff]   ;;  %v345_v14 = vand.u32 127, %v344_v13  ;;  %s473_s8 = sshll.u32 %s269_s12, 4  ;;  %s1148_s6 = scalar_lea.hbm %s1196_s4, %s611_s10  ;;  %s1143_s8 = int_to_ptr.vmem [resolvable:$true] %s473_s8 }
  0x81   : > { %624 = vmatpush3.bf16.msra.mxu0 %v719_v1  ;;  %630 = vmatpush3.bf16.msra.mxu1 %v720_v5  ;;  %v725_v10 = vld [vmem:[#allocation7 + $0x28] sm:$0xff]   ;;  %v726_v11 = vld [vmem:[#allocation7 + $0x30] sm:$0xff]   ;;  %v727_v12 = vld [vmem:[#allocation7 + $0x38] sm:$0xff]   ;;  %s460_s7 = scalar_lea.sflag [#allocation4], %s1117_s25  ;;  %s820_s19 = scalar_lea.vmem %s1143_s8, 256 }
  0x82   : > { %631 = vmatprep.subr.bf16.mxu1 %v903_v0  ;;  %vm346_vm2 = vcmp.eq.s32.totalorder %v345_v14, 32  ;;  %v603_v27 = vld [vmem:[%s1195_s3] ss:$0 sm:$0xff]  ;;  %p821_p3 = scmp.ne.s32.totalorder %s1143_s8, %s820_s19  ;;  %s905_s2 = smov [#allocation8]  }
  0x83   : > { %s824_s28 = sshll.u32 %s905_s2, 4  ;;  %s825_s28 = int_to_ptr.vmem [resolvable:$false] %s824_s28 }
  0x84   : > { %626 = vmatmul.mubr.msk.bf16.vlgmr.msra.gmra.mrb[0].mxu0 %vm299_vm1, %v290_v4  ;;  %p822_p7 = pnand %p821_p3, %p1027_p12  ;;  %s826_s20 = scalar_lea.vmem %s825_s28, 512 }
  0x85   : > { %632 = vmatpush3.bf16.msra.mxu1 %v721_v6  ;;  %p827_p1 = scmp.lt.s32.totalorder %s1143_s8, %s825_s28  ;;  %p828_p5 = scmp.lt.s32.totalorder %s826_s20, %s820_s19 }
  0x86   : > { %633 = vmatprep.subr.bf16.mxu1 %v903_v0  ;;  %p823_p9 = pneg %p822_p7 }
  0x87   : > { %p829_p2 = por %p828_p5, %p827_p1 }
  0x89   : > { %634 = vmatpush3.bf16.msra.mxu1 %v722_v7  ;;  %p830_p6 = pnand %p829_p2, %p823_p9 }
  0x8a   : > { %635 = vmatprep.subr.bf16.mxu1 %v903_v0 }
  0x8d   : > { %636 = vmatpush3.bf16.msra.mxu1 %v723_v8 }
  0x8e   : > { %637 = vmatprep.subr.bf16.mxu1 %v903_v0 }
  0x91   : > { %638 = vmatpush3.bf16.msra.mxu1 %v724_v9 }
  0x92   : > { %639 = vmatprep.subr.bf16.mxu1 %v903_v0 }
  0x95   : > { %640 = vmatpush3.bf16.msra.mxu1 %v725_v10 }
  0x96   : > { %641 = vmatprep.subr.bf16.mxu1 %v903_v0 }
  0x99   : > { %642 = vmatpush3.bf16.msra.mxu1 %v726_v11 }
  0x9a   : > { %643 = vmatprep.subr.bf16.mxu1 %v903_v0 }
  0x9d   : > { %644 = vmatpush3.bf16.msra.mxu1 %v727_v12 }
 0x157   : > { %v337_v15 = vpop.f32.mrb[0].mxu0 }
 0x158   : > { %v627_v16 = vpop.f32.mrb[1].mxu0  ;;  %v347_v17 = vsel %vm346_vm2, %v337_v15, 0.0 }
 0x159   : > { %349 = vadd.xlane.f32.xlu0 %v347_v17  ;;  %v340_v18 = vpop.f32.mrb[2].mxu0 }
 0x15a   : > { %v357_v19 = vpack.c.bf16 %v340_v18, %v337_v15  ;;  %v628_v20 = vpop.f32.mrb[3].mxu0  ;;  %v348_v21 = vsel %vm346_vm2, %v340_v18, 0.0 }
 0x15c   : > { %646 = vmatmul.mubr.bf16.vlgmr.msra.gmra.mrb[0].mxu1 %v357_v19 }
 0x15d   : > { %351 = vadd.xlane.f32.xlu0 %v348_v21 }
 0x1e6   : > { %v350_v22 = vpop.xlane.xlu0 %349 }
 0x1e7   : > { %v353_v24 = vadd.f32 1.0, %v350_v22 }
 0x1e9   : > { %728 = vrcp.f32 %v353_v24 }
 0x1ea   : > { %v352_v23 = vpop.xlane.xlu0 %351 }
 0x1eb   : > { %v354_v25 = vadd.f32 1.0, %v352_v23 }
 0x1ed   : > { %730 = vrcp.f32 %v354_v25 }
 0x1f3   : > { %v729_v26 = vpop.eup %728 }
 0x1f7   : > { %v731_v31 = vpop.eup %730 }
 0x22f   : > { %v440_v28 = vpop.f32.mrb[0].mxu1 }
 0x230   : > { %v447_v29 = vmul.f32 %v729_v26, %v440_v28  ;;  %v647_v30 = vpop.f32.mrb[1].mxu1 }
 0x231   : > { %v443_v32 = vpop.f32.mrb[2].mxu1 }
 0x232   : > { %v455_v33 = vadd.f32 %v603_v27, %v447_v29  ;;  %v448_v34 = vmul.f32 %v731_v31, %v443_v32  ;;  %v648_v35 = vpop.f32.mrb[3].mxu1 }
 0x234   : > { %457 = vst [vmem:[%s269_s12] sm:$0xff] %v455_v33  ;;  %v456_v36 = vadd.f32 %v603_v27, %v448_v34 }
 0x236   : > { %458 = vst [vmem:[%s269_s12 + $0x8] sm:$0xff] %v456_v36 }
 0x237   : > { %833 = shalt.err (!%p830_p6)
}
 0x238   : > { %s834_s26 = scalar_lea.hbm %s1148_s6, 256  ;;  %s838_s23 = scalar_lea.hbm %s1196_s4, 512 }
 0x239   : > { %p835_p8 = scmp.ne.s32.totalorder %s1148_s6, %s834_s26  ;;  %p839_p4 = scmp.lt.u32.totalorder %s1148_s6, %s1196_s4 }
 0x23a   : > { %p840_p11 = scmp.lt.u32.totalorder %s838_s23, %s834_s26  ;;  %p842_p3 = scmp.lt.u32.totalorder %s834_s26, %s1148_s6 }
 0x23b   : > { %p836_p10 = pnand %p835_p8, %p1027_p12 }
 0x23c   : > { %p841_p13 = por %p840_p11, %p839_p4 }
 0x23d   : > { %p837_p0 = pneg %p836_p10 }
 0x23e   : > { %p843_p7 = por %p842_p3, %p841_p13 }
 0x240   : > { %p844_p9 = pnand %p843_p7, %p837_p0 }
 0x242   : > { %847 = shalt.err (!%p844_p9)
}
 0x243   : > { %s906_s21 = smov 128   ;;  %s907_s29 = smov 8  }
 0x244   : > { %657 = dma.vmem_to_hbm [thread:$0]  (%p1027_p12), %s1143_s8, 256, %s1148_s6, %s460_s7, %s906_s21, %s906_s21, %s907_s29  }
 0x245 PF: > { %s488_s12 = sand.u32 1, %s882_s15   ;;  %p1219_p1 = scmp.ne.s32.totalorder %s1205_s22, 0 }
 0x246   : > { %p1220_p5 = scmp.ge.s32.totalorder %s894_s18, 2  ;;  %s489_s10 = scalar_lea.sflag [#allocation4], %s488_s12 }
 0x248   : > { %p671_p2 = pnand %p1220_p5, %p1219_p1 }
 0x24a   : > { %877 = dma.done.wait (!%p671_p2), %s489_s10, 256  }
 0x24b   : > { %879 = vsyncadd (!%p671_p2), %s489_s10, 4294967040  ;;  %p20_p6 = scmp.ge.s32.totalorder %s989_s27, 4   ;;  %s1221_s15 = smov %s886_s16 }
 0x24c   : > { %s1222_s16 = smov %s890_s17  ;;  %s1223_s17 = smov %s1023_s24 }
 0x24d   : > { %s1224_s18 = smov %s989_s27  ;;  %22 = sbr.rel (!%p20_p6) target bundleno = 10 (0xa), region = 98 }
 0x254   :  { %494 = vsyncpa [#allocation3], 1 }
 0x255   :  { %496 = vsyncpa [#allocation3 + $0x1], 1 }
 0x256   :  { %497 = vsyncpa [#allocation6], 1 }
 0x257   :  { %499 = vsyncpa [#allocation6 + $0x1], 1 }
 0x258   :  { %500 = vsyncpa [#allocation4], 1 }
 0x259   :  { %502 = vsyncpa [#allocation4 + $0x1], 1 }

</bundles_post_ra>
